<compile_context>
chip_gen: v7x
topology: tpu7x:2x2x1
jax: 0.10.0
libtpu: 0.0.40
codegen_flags: <defaults>
</compile_context>

<pallas_src>
import functools

import jax
import jax.numpy as jnp
from jax.experimental import pallas as pl
from jax.experimental.pallas import tpu as pltpu


HIDDEN = 64
IN_FEAT = 4
NUM_CLASSES = 3
NUM_UNIT = 3

# Padded dims used inside the kernel.
FEAT_P = 8        # IN_FEAT (4)      -> 8   (small K for the emb matmul)
HID_P = 128       # HIDDEN (64)      -> 128 (lane-aligned)
CLS_P = 128       # NUM_CLASSES (3)  -> 128 (lane-dense output stores)

# aux slab layout (f32, (AUX_ROWS, HID_P)):
#   rows 0..7  : node_emb weight  (IN_FEAT x HIDDEN, zero padded)
#   row  8     : node_emb bias
#   rows 9..11 : conv0 / conv1 / conv2 bias
#   row  12    : lin1 bias
#   row  13    : lin2 bias (NUM_CLASSES cols, zero padded)
AUX_ROWS = 16
ROW_EMB_B = 8
ROW_CONV_B = 9
ROW_LIN1_B = 12
ROW_LIN2_B = 13

# Matmul-operand dtype (accumulation is always f32 on the MXU).
MXU_DTYPE = jnp.bfloat16


def _round_up(n, m):
    return ((n + m - 1) // m) * m


def _pad2d(x, shape):
    return jnp.pad(x, [(0, s - d) for d, s in zip(x.shape, shape)])


def _vmem_limit_bytes():
    """Per-generation VMEM request with headroom (v7x has only 64 MiB/TC)."""
    cap = None
    try:
        cap = getattr(pltpu.get_tpu_info(), "vmem_capacity_bytes", None)
    except Exception:
        cap = None
    if not cap:
        cap = 128 * 1024 * 1024          # conservative v5e/v6e default
    limit = min(int(cap) - 8 * 1024 * 1024, 110 * 1024 * 1024)
    return max(limit, 32 * 1024 * 1024)


# ----------------------------------------------------------------------------
# Fused Pallas kernel: whole GCN forward on padded, VMEM-resident operands.
#   x_ref    (np_pad, FEAT_P)   f32
#   a_ref    (np_pad, np_pad)   bf16   normalized adjacency A_hat
#   pool_ref (ng_pad, np_pad)   bf16   mean-pool matrix
#   w_ref    (5, HID_P, HID_P)  bf16   conv0/1/2, lin1, lin2 weights
#   aux_ref  (AUX_ROWS, HID_P)  f32    emb weight + all biases
#   out_ref  (ng_pad, CLS_P)    f32
# ----------------------------------------------------------------------------
def _gcn_fused_kernel(x_ref, a_ref, pool_ref, w_ref, aux_ref, out_ref):
    def mxu(a, b):  # bf16 (or f32) operands, f32 accumulation
        return jnp.dot(a.astype(MXU_DTYPE), b.astype(MXU_DTYPE),
                       preferred_element_type=jnp.float32)

    aux = aux_ref[...]                                   # (16, 128) f32
    emb_w = aux[0:FEAT_P, :]                             # (8, 128)
    emb_b = aux[ROW_EMB_B:ROW_EMB_B + 1, :]              # (1, 128)
    lin1_b = aux[ROW_LIN1_B:ROW_LIN1_B + 1, :]
    lin2_b = aux[ROW_LIN2_B:ROW_LIN2_B + 1, :]

    a_hat = a_ref[...]          # loaded once, resident across all conv layers

    # node_emb(x)  (bias / activations kept in f32)
    h = mxu(x_ref[...], emb_w) + emb_b
    # TODO(synk): F.dropout(p=0.4, training=True) is stochastic in the
    # reference; applied as identity here (deterministic inference semantics).

    # GCNConv layers:  h <- relu( A_hat @ (h W) + b )
    for i in range(NUM_UNIT):
        b_i = aux[ROW_CONV_B + i:ROW_CONV_B + i + 1, :]
        hw = mxu(h, w_ref[i])
        h = jnp.maximum(mxu(a_hat, hw) + b_i, 0.0)

    # global_mean_pool(node_x, batch)  ==  pool_mat @ h
    g = mxu(pool_ref[...], h)

    # lin1 + relu, lin2  (Softmax is defined on the module but not applied in
    # forward(), so it is not applied here either.)
    g = jnp.maximum(mxu(g, w_ref[NUM_UNIT]) + lin1_b, 0.0)
    out_ref[...] = (mxu(g, w_ref[NUM_UNIT + 1]) + lin2_b).astype(out_ref.dtype)


# ----------------------------------------------------------------------------
# Parameter init (deterministic, matches the module's __init__ shapes)
# ----------------------------------------------------------------------------
def init_params(key):
    def lin_init(k, fan_in, fan_out):
        kw, kb = jax.random.split(k)
        scale = 1.0 / jnp.sqrt(fan_in)
        w = jax.random.uniform(kw, (fan_in, fan_out), jnp.float32, -scale, scale)
        b = jax.random.uniform(kb, (fan_out,), jnp.float32, -scale, scale)
        return w, b

    keys = jax.random.split(key, 3 + NUM_UNIT)
    emb_w, emb_b = lin_init(keys[0], IN_FEAT, HIDDEN)
    conv_w, conv_b = [], []
    for i in range(NUM_UNIT):
        w, b = lin_init(keys[1 + i], HIDDEN, HIDDEN)
        conv_w.append(w)
        conv_b.append(b)
    lin1_w, lin1_b = lin_init(keys[1 + NUM_UNIT], HIDDEN, HIDDEN)
    lin2_w, lin2_b = lin_init(keys[2 + NUM_UNIT], HIDDEN, NUM_CLASSES)
    return dict(
        emb_w=emb_w, emb_b=emb_b,
        conv_w=conv_w, conv_b=conv_b,
        lin1_w=lin1_w, lin1_b=lin1_b,
        lin2_w=lin2_w, lin2_b=lin2_b,
    )


# ----------------------------------------------------------------------------
# Forward pass (mirrors GCN.forward / get_node_reps)
# ----------------------------------------------------------------------------
@functools.partial(jax.jit, static_argnames=("num_graphs",))
def gcn_forward(params, x, edge_index, batch, num_graphs):
    num_nodes = x.shape[0]
    np_pad = _round_up(num_nodes, 128)     # lane-aligned padded node count
    ng_pad = _round_up(num_graphs, 8)      # sublane-aligned padded graph count

    # ---- plain-JAX graph preprocessing, built directly at padded shape ------
    # Symmetric-normalized adjacency with self loops: A_hat[dst, src].
    # Scatter straight into the (np_pad, np_pad) buffer; dinv scaling and the
    # bf16 cast fuse into a single elementwise pass (no separate pad pass).
    row, col = edge_index[0], edge_index[1]            # (src, dst), PyG convention
    edge_weight = jnp.ones((edge_index.shape[1],), jnp.float32)   # edge_attr = 1
    A = jnp.zeros((np_pad, np_pad), jnp.float32).at[col, row].add(edge_weight)
    diag = jnp.arange(num_nodes)
    A = A.at[diag, diag].add(1.0)                       # self loops, fill value 1
    deg = A.sum(axis=1)                                 # padded rows -> deg 0
    dinv = jnp.where(deg > 0, jax.lax.rsqrt(deg), 0.0)
    a_p = (dinv[:, None] * A * dinv[None, :]).astype(MXU_DTYPE)

    # global_mean_pool as an averaging matrix, built at (ng_pad, np_pad).
    batch_p = jnp.pad(batch.astype(jnp.int32), (0, np_pad - num_nodes),
                      constant_values=-1)               # padded nodes match no graph
    gids = jnp.arange(ng_pad, dtype=jnp.int32)
    onehot = (batch_p[None, :] == gids[:, None]).astype(jnp.float32)
    counts = onehot.sum(axis=1, keepdims=True)
    pool_p = (onehot / jnp.maximum(counts, 1.0)).astype(MXU_DTYPE)

    # Node features: only pad to FEAT_P=8 lanes (kernel casts to MXU dtype).
    x_p = _pad2d(x.astype(jnp.float32), (np_pad, FEAT_P))

    # ---- pack parameters: 5 weight mats in one array, emb_w + biases in aux -
    w_pack = jnp.stack(
        [_pad2d(params["conv_w"][i], (HID_P, HID_P)) for i in range(NUM_UNIT)]
        + [_pad2d(params["lin1_w"], (HID_P, HID_P)),
           _pad2d(params["lin2_w"], (HID_P, HID_P))],
        axis=0).astype(MXU_DTYPE)                        # (5, 128, 128)

    aux = jnp.zeros((AUX_ROWS, HID_P), jnp.float32)
    aux = aux.at[:IN_FEAT, :HIDDEN].set(params["emb_w"])
    aux = aux.at[ROW_EMB_B, :HIDDEN].set(params["emb_b"])
    for i in range(NUM_UNIT):
        aux = aux.at[ROW_CONV_B + i, :HIDDEN].set(params["conv_b"][i])
    aux = aux.at[ROW_LIN1_B, :HIDDEN].set(params["lin1_b"])
    aux = aux.at[ROW_LIN2_B, :NUM_CLASSES].set(params["lin2_b"])

    ins = [x_p, a_p, pool_p, w_pack, aux]

    # Full-array blocks; Buffered(1) single-buffers the grid-invariant inputs
    # (with grid=(1,) the default double-buffering would just duplicate A_hat).
    def full_spec(arr):
        nd = arr.ndim
        return pl.BlockSpec(arr.shape, lambda i, _nd=nd: (0,) * _nd,
                            pipeline_mode=pl.Buffered(1))

    out = pl.pallas_call(
        _gcn_fused_kernel,
        out_shape=jax.ShapeDtypeStruct((ng_pad, CLS_P), jnp.float32),
        grid=(1,),
        in_specs=[full_spec(a_) for a_ in ins],
        out_specs=pl.BlockSpec((ng_pad, CLS_P), lambda i: (0, 0)),
        compiler_params=pltpu.CompilerParams(
            dimension_semantics=("arbitrary",),
            vmem_limit_bytes=_vmem_limit_bytes(),
        ),
    )(*ins)

    return out[:num_graphs, :NUM_CLASSES]


# ----------------------------------------------------------------------------
if __name__ == "__main__":
    key = jax.random.PRNGKey(0)
    k_param, k_x = jax.random.split(key)

    params = init_params(k_param)

    # Small synthetic batch: 2 graphs of 8 nodes each (16 nodes total),
    # each graph a bidirectional ring.
    num_nodes = 16
    nodes_per_graph = 8
    num_graphs = 2

    x = jax.random.normal(k_x, (num_nodes, IN_FEAT), dtype=jnp.float32)

    src_list, dst_list = [], []
    for g in range(num_graphs):
        base = g * nodes_per_graph
        for i in range(nodes_per_graph):
            a = base + i
            b = base + (i + 1) % nodes_per_graph
            src_list += [a, b]
            dst_list += [b, a]
    edge_index = jnp.array([src_list, dst_list], dtype=jnp.int32)  # [2, E]

    batch = jnp.repeat(jnp.arange(num_graphs, dtype=jnp.int32), nodes_per_graph)

    pred = gcn_forward(params, x, edge_index, batch, num_graphs)
    pred = jax.block_until_ready(pred)

    assert pred.shape == (num_graphs, NUM_CLASSES), pred.shape
    assert bool(jnp.all(jnp.isfinite(pred)))
    print("KERNEL_OK")
</pallas_src>

<mosaic_0001>
module attributes {stable_mosaic.version = 11 : i64} {
  func.func private @main(%arg0: i32) attributes {dimension_semantics = [#tpu.dimension_semantics<core_parallel>], iteration_bounds = array<i64: 2>, tpu.core_type = #tpu.core_type<sc_scalar_subcore>, window_params = []} {
    return
  }
}

module attributes {stable_mosaic.version = 11 : i64} {
  func.func private @main(%arg0: i32) attributes {dimension_semantics = [#tpu.dimension_semantics<core_parallel>], iteration_bounds = array<i64: 2>, tpu.core_type = #tpu.core_type<sc_scalar_subcore>, window_params = []} {
    return
  }
}

module attributes {stable_mosaic.version = 11 : i64} {
  func.func @_gcn_fused_kernel(%arg0: i32, %arg1: memref<128x8xf32, #tpu.memory_space<vmem>>, %arg2: memref<128x128xbf16, #tpu.memory_space<vmem>>, %arg3: memref<8x128xbf16, #tpu.memory_space<vmem>>, %arg4: memref<5x128x128xbf16, #tpu.memory_space<vmem>>, %arg5: memref<16x128xf32, #tpu.memory_space<vmem>>, %arg6: memref<8x128xf32, #tpu.memory_space<vmem>>) attributes {dimension_semantics = [#tpu.dimension_semantics<arbitrary>], iteration_bounds = array<i64: 1>, scalar_prefetch = 0 : i64, scratch_operands = 0 : i64, tpu.core_type = #tpu.core_type<tc>, window_params = [{pipeline_mode = #tpu.pipeline_mode<synchronous>, transform_indices = @transform_0, window_bounds = array<i64: 128, 8>}, {pipeline_mode = #tpu.pipeline_mode<synchronous>, transform_indices = @transform_1, window_bounds = array<i64: 128, 128>}, {pipeline_mode = #tpu.pipeline_mode<synchronous>, transform_indices = @transform_2, window_bounds = array<i64: 8, 128>}, {pipeline_mode = #tpu.pipeline_mode<synchronous>, transform_indices = @transform_3, window_bounds = array<i64: 5, 128, 128>}, {pipeline_mode = #tpu.pipeline_mode<synchronous>, transform_indices = @transform_4, window_bounds = array<i64: 16, 128>}, {pipeline_mode = #tpu.pipeline_mode<synchronous>, transform_indices = @transform_5, window_bounds = array<i64: 8, 128>}]} {
    %c0 = arith.constant 0 : index
    %c0_0 = arith.constant 0 : index
    %0 = vector.load %arg5[%c0, %c0_0] : memref<16x128xf32, #tpu.memory_space<vmem>>, vector<16x128xf32>
    %1 = vector.extract_strided_slice %0 {offsets = [0, 0], sizes = [8, 128], strides = [1, 1]} : vector<16x128xf32> to vector<8x128xf32>
    %2 = vector.extract_strided_slice %0 {offsets = [8, 0], sizes = [1, 128], strides = [1, 1]} : vector<16x128xf32> to vector<1x128xf32>
    %3 = vector.extract_strided_slice %0 {offsets = [12, 0], sizes = [1, 128], strides = [1, 1]} : vector<16x128xf32> to vector<1x128xf32>
    %4 = vector.extract_strided_slice %0 {offsets = [13, 0], sizes = [1, 128], strides = [1, 1]} : vector<16x128xf32> to vector<1x128xf32>
    %c0_1 = arith.constant 0 : index
    %c0_2 = arith.constant 0 : index
    %5 = vector.load %arg2[%c0_1, %c0_2] : memref<128x128xbf16, #tpu.memory_space<vmem>>, vector<128x128xbf16>
    %c0_3 = arith.constant 0 : index
    %c0_4 = arith.constant 0 : index
    %6 = vector.load %arg1[%c0_3, %c0_4] : memref<128x8xf32, #tpu.memory_space<vmem>>, vector<128x8xf32>
    %7 = arith.truncf %6 : vector<128x8xf32> to vector<128x8xbf16>
    %8 = arith.truncf %1 : vector<8x128xf32> to vector<8x128xbf16>
    %cst = arith.constant dense<0.000000e+00> : vector<128x128xf32>
    %9 = tpu.matmul %7, %8, %cst {dimension_numbers = #tpu.dot_dimension_numbers<[1], [0], [0], [1], [0, 0, 1, 1], [], []>} : vector<128x8xbf16>, vector<8x128xbf16>, vector<128x128xf32> -> vector<128x128xf32>
    %10 = vector.broadcast %2 : vector<1x128xf32> to vector<128x128xf32>
    %11 = arith.addf %9, %10 : vector<128x128xf32>
    %12 = vector.extract_strided_slice %0 {offsets = [9, 0], sizes = [1, 128], strides = [1, 1]} : vector<16x128xf32> to vector<1x128xf32>
    %c0_5 = arith.constant 0 : index
    %c0_6 = arith.constant 0 : index
    %c0_7 = arith.constant 0 : index
    %13 = vector.load %arg4[%c0_5, %c0_6, %c0_7] : memref<5x128x128xbf16, #tpu.memory_space<vmem>>, vector<1x128x128xbf16>
    %14 = vector.shape_cast %13 : vector<1x128x128xbf16> to vector<128x128xbf16>
    %15 = arith.truncf %11 : vector<128x128xf32> to vector<128x128xbf16>
    %cst_8 = arith.constant dense<0.000000e+00> : vector<128x128xf32>
    %16 = tpu.matmul %15, %14, %cst_8 {dimension_numbers = #tpu.dot_dimension_numbers<[1], [0], [0], [1], [0, 0, 1, 1], [], []>} : vector<128x128xbf16>, vector<128x128xbf16>, vector<128x128xf32> -> vector<128x128xf32>
    %17 = arith.truncf %16 : vector<128x128xf32> to vector<128x128xbf16>
    %cst_9 = arith.constant dense<0.000000e+00> : vector<128x128xf32>
    %18 = tpu.matmul %5, %17, %cst_9 {dimension_numbers = #tpu.dot_dimension_numbers<[1], [0], [0], [1], [0, 0, 1, 1], [], []>} : vector<128x128xbf16>, vector<128x128xbf16>, vector<128x128xf32> -> vector<128x128xf32>
    %19 = vector.broadcast %12 : vector<1x128xf32> to vector<128x128xf32>
    %20 = arith.addf %18, %19 : vector<128x128xf32>
    %cst_10 = arith.constant 0.000000e+00 : f32
    %21 = vector.broadcast %cst_10 : f32 to vector<128x128xf32>
    %22 = arith.maximumf %20, %21 : vector<128x128xf32>
    %23 = vector.extract_strided_slice %0 {offsets = [10, 0], sizes = [1, 128], strides = [1, 1]} : vector<16x128xf32> to vector<1x128xf32>
    %c1 = arith.constant 1 : index
    %c0_11 = arith.constant 0 : index
    %c0_12 = arith.constant 0 : index
    %24 = vector.load %arg4[%c1, %c0_11, %c0_12] : memref<5x128x128xbf16, #tpu.memory_space<vmem>>, vector<1x128x128xbf16>
    %25 = vector.shape_cast %24 : vector<1x128x128xbf16> to vector<128x128xbf16>
    %26 = arith.truncf %22 : vector<128x128xf32> to vector<128x128xbf16>
    %cst_13 = arith.constant dense<0.000000e+00> : vector<128x128xf32>
    %27 = tpu.matmul %26, %25, %cst_13 {dimension_numbers = #tpu.dot_dimension_numbers<[1], [0], [0], [1], [0, 0, 1, 1], [], []>} : vector<128x128xbf16>, vector<128x128xbf16>, vector<128x128xf32> -> vector<128x128xf32>
    %28 = arith.truncf %27 : vector<128x128xf32> to vector<128x128xbf16>
    %cst_14 = arith.constant dense<0.000000e+00> : vector<128x128xf32>
    %29 = tpu.matmul %5, %28, %cst_14 {dimension_numbers = #tpu.dot_dimension_numbers<[1], [0], [0], [1], [0, 0, 1, 1], [], []>} : vector<128x128xbf16>, vector<128x128xbf16>, vector<128x128xf32> -> vector<128x128xf32>
    %30 = vector.broadcast %23 : vector<1x128xf32> to vector<128x128xf32>
    %31 = arith.addf %29, %30 : vector<128x128xf32>
    %cst_15 = arith.constant 0.000000e+00 : f32
    %32 = vector.broadcast %cst_15 : f32 to vector<128x128xf32>
    %33 = arith.maximumf %31, %32 : vector<128x128xf32>
    %34 = vector.extract_strided_slice %0 {offsets = [11, 0], sizes = [1, 128], strides = [1, 1]} : vector<16x128xf32> to vector<1x128xf32>
    %c2 = arith.constant 2 : index
    %c0_16 = arith.constant 0 : index
    %c0_17 = arith.constant 0 : index
    %35 = vector.load %arg4[%c2, %c0_16, %c0_17] : memref<5x128x128xbf16, #tpu.memory_space<vmem>>, vector<1x128x128xbf16>
    %36 = vector.shape_cast %35 : vector<1x128x128xbf16> to vector<128x128xbf16>
    %37 = arith.truncf %33 : vector<128x128xf32> to vector<128x128xbf16>
    %cst_18 = arith.constant dense<0.000000e+00> : vector<128x128xf32>
    %38 = tpu.matmul %37, %36, %cst_18 {dimension_numbers = #tpu.dot_dimension_numbers<[1], [0], [0], [1], [0, 0, 1, 1], [], []>} : vector<128x128xbf16>, vector<128x128xbf16>, vector<128x128xf32> -> vector<128x128xf32>
    %39 = arith.truncf %38 : vector<128x128xf32> to vector<128x128xbf16>
    %cst_19 = arith.constant dense<0.000000e+00> : vector<128x128xf32>
    %40 = tpu.matmul %5, %39, %cst_19 {dimension_numbers = #tpu.dot_dimension_numbers<[1], [0], [0], [1], [0, 0, 1, 1], [], []>} : vector<128x128xbf16>, vector<128x128xbf16>, vector<128x128xf32> -> vector<128x128xf32>
    %41 = vector.broadcast %34 : vector<1x128xf32> to vector<128x128xf32>
    %42 = arith.addf %40, %41 : vector<128x128xf32>
    %cst_20 = arith.constant 0.000000e+00 : f32
    %43 = vector.broadcast %cst_20 : f32 to vector<128x128xf32>
    %44 = arith.maximumf %42, %43 : vector<128x128xf32>
    %c0_21 = arith.constant 0 : index
    %c0_22 = arith.constant 0 : index
    %45 = vector.load %arg3[%c0_21, %c0_22] : memref<8x128xbf16, #tpu.memory_space<vmem>>, vector<8x128xbf16>
    %46 = arith.truncf %44 : vector<128x128xf32> to vector<128x128xbf16>
    %cst_23 = arith.constant dense<0.000000e+00> : vector<8x128xf32>
    %47 = tpu.matmul %45, %46, %cst_23 {dimension_numbers = #tpu.dot_dimension_numbers<[1], [0], [0], [1], [0, 0, 1, 1], [], []>} : vector<8x128xbf16>, vector<128x128xbf16>, vector<8x128xf32> -> vector<8x128xf32>
    %c3 = arith.constant 3 : index
    %c0_24 = arith.constant 0 : index
    %c0_25 = arith.constant 0 : index
    %48 = vector.load %arg4[%c3, %c0_24, %c0_25] : memref<5x128x128xbf16, #tpu.memory_space<vmem>>, vector<1x128x128xbf16>
    %49 = vector.shape_cast %48 : vector<1x128x128xbf16> to vector<128x128xbf16>
    %50 = arith.truncf %47 : vector<8x128xf32> to vector<8x128xbf16>
    %cst_26 = arith.constant dense<0.000000e+00> : vector<8x128xf32>
    %51 = tpu.matmul %50, %49, %cst_26 {dimension_numbers = #tpu.dot_dimension_numbers<[1], [0], [0], [1], [0, 0, 1, 1], [], []>} : vector<8x128xbf16>, vector<128x128xbf16>, vector<8x128xf32> -> vector<8x128xf32>
    %52 = vector.broadcast %3 : vector<1x128xf32> to vector<8x128xf32>
    %53 = arith.addf %51, %52 : vector<8x128xf32>
    %cst_27 = arith.constant 0.000000e+00 : f32
    %54 = vector.broadcast %cst_27 : f32 to vector<8x128xf32>
    %55 = arith.maximumf %53, %54 : vector<8x128xf32>
    %c4 = arith.constant 4 : index
    %c0_28 = arith.constant 0 : index
    %c0_29 = arith.constant 0 : index
    %56 = vector.load %arg4[%c4, %c0_28, %c0_29] : memref<5x128x128xbf16, #tpu.memory_space<vmem>>, vector<1x128x128xbf16>
    %57 = vector.shape_cast %56 : vector<1x128x128xbf16> to vector<128x128xbf16>
    %58 = arith.truncf %55 : vector<8x128xf32> to vector<8x128xbf16>
    %cst_30 = arith.constant dense<0.000000e+00> : vector<8x128xf32>
    %59 = tpu.matmul %58, %57, %cst_30 {dimension_numbers = #tpu.dot_dimension_numbers<[1], [0], [0], [1], [0, 0, 1, 1], [], []>} : vector<8x128xbf16>, vector<128x128xbf16>, vector<8x128xf32> -> vector<8x128xf32>
    %60 = vector.broadcast %4 : vector<1x128xf32> to vector<8x128xf32>
    %61 = arith.addf %59, %60 : vector<8x128xf32>
    %c0_31 = arith.constant 0 : index
    %c0_32 = arith.constant 0 : index
    %62 = vector.load %arg6[%c0_31, %c0_32] : memref<8x128xf32, #tpu.memory_space<vmem>>, vector<8x128xf32>
    tpu.vector_store %arg6[%c0_31, %c0_32], %61 {strides = array<i32>} : memref<8x128xf32, #tpu.memory_space<vmem>>, vector<8x128xf32>,
    return
  }
  func.func @transform_0(%arg0: i32) -> (i32, i32) {
    %c0_i32 = arith.constant 0 : i32
    %c0_i32_0 = arith.constant 0 : i32
    %c0_i32_1 = arith.constant 0 : i32
    return %c0_i32, %c0_i32_0 : i32, i32
  }
  func.func @transform_1(%arg0: i32) -> (i32, i32) {
    %c0_i32 = arith.constant 0 : i32
    %c0_i32_0 = arith.constant 0 : i32
    %c0_i32_1 = arith.constant 0 : i32
    return %c0_i32, %c0_i32_0 : i32, i32
  }
  func.func @transform_2(%arg0: i32) -> (i32, i32) {
    %c0_i32 = arith.constant 0 : i32
    %c0_i32_0 = arith.constant 0 : i32
    %c0_i32_1 = arith.constant 0 : i32
    return %c0_i32, %c0_i32_0 : i32, i32
  }
  func.func @transform_3(%arg0: i32) -> (i32, i32, i32) {
    %c0_i32 = arith.constant 0 : i32
    %c0_i32_0 = arith.constant 0 : i32
    %c0_i32_1 = arith.constant 0 : i32
    %c0_i32_2 = arith.constant 0 : i32
    return %c0_i32, %c0_i32_0, %c0_i32_1 : i32, i32, i32
  }
  func.func @transform_4(%arg0: i32) -> (i32, i32) {
    %c0_i32 = arith.constant 0 : i32
    %c0_i32_0 = arith.constant 0 : i32
    %c0_i32_1 = arith.constant 0 : i32
    return %c0_i32, %c0_i32_0 : i32, i32
  }
  func.func @transform_5(%arg0: i32) -> (i32, i32) {
    %c0_i32 = arith.constant 0 : i32
    %c0_i32_0 = arith.constant 0 : i32
    %c0_i32_1 = arith.constant 0 : i32
    return %c0_i32, %c0_i32_0 : i32, i32
  }
}

</mosaic_0001>

<bundles_post_ra>
// kernel: gcn_forward.1
= control target key start
LH: loop header
LB: loop body
LE: loop exit
PB: predicated region body
PF: predicated region fallthrough
CT: control target
= control target key end

     0   :  { %10 = vsyncpa [#allocation3], 0  ;;  %s2353_s0 = inlined_call_operand.hbm [shape: f32[128,8], index: 0, kind: input, shape index: {}]   ;;  %s2354_s1 = inlined_call_operand.hbm [shape: bf16[128,128], index: 1, kind: input, shape index: {}]   ;;  %s2355_s2 = inlined_call_operand.hbm [shape: bf16[8,128], index: 2, kind: input, shape index: {}]   ;;  %s2356_s3 = inlined_call_operand.hbm [shape: bf16[5,128,128], index: 3, kind: input, shape index: {}]   ;;  %s2357_s4 = inlined_call_operand.hbm [shape: f32[16,128], index: 4, kind: input, shape index: {}]   ;;  %s2358_s5 = inlined_call_operand.hbm [shape: f32[8,128], index: 5, kind: output, shape index: {}]  }
   0x1   :  { %11 = vsyncpa [#allocation6], 0 }
   0x2   :  { %12 = vsyncpa [#allocation9], 0 }
   0x3   :  { %13 = vsyncpa [#allocation4], 0  ;;  %s2141_s18 = smov [#allocation5]   ;;  %s2001_s22 = scalar_lea.hbm %s2354_s1, 1024 }
   0x4   :  { %s31_s19 = sshll.u32 %s2141_s18, 4  ;;  %p2002_p0 = scmp.ne.s32.totalorder %s2354_s1, %s2001_s22  ;;  %s32_s19 = int_to_ptr.vmem [resolvable:$true] %s31_s19 }
   0x5   :  { %p2005_p1 = scmp.lt.u32.totalorder %s2001_s22, %s2354_s1 }
   0x7   :  { %p2007_p2 = pnand %p2005_p1, %p2002_p0 }
   0x9   :  { %2010 = shalt.err (!%p2007_p2)
}
   0xa   :  { %s2011_s27 = scalar_lea.vmem %s32_s19, 1024  ;;  %p2016_p4 = scmp.lt.s32.totalorder %s32_s19, %s32_s19 }
   0xb   :  { %p2012_p3 = scmp.ne.s32.totalorder %s32_s19, %s2011_s27  ;;  %p2017_p5 = scmp.lt.s32.totalorder %s2011_s27, %s2011_s27 }
   0xd   :  { %p2018_p6 = por %p2017_p5, %p2016_p4 }
   0xf   :  { %p2019_p7 = pnand %p2018_p6, %p2012_p3 }
  0x11   :  { %2022 = shalt.err (!%p2019_p7)
}
  0x12   :  { %s2142_s28 = smov 64   ;;  %s2143_s29 = smov 4  }
  0x13   :  { %37 = dma.hbm_to_vmem [thread:$0]  %s2354_s1, 1024, %s32_s19, [#allocation6], %s2142_s28, %s2142_s28, %s2143_s29  }
  0x14   :  { %s2144_s7 = smov [#allocation8]   ;;  %s2145_s9 = smov [#allocation2]  }
  0x15   :  { %s53_s8 = sshll.u32 %s2144_s7, 4  ;;  %s19_s10 = sshll.u32 %s2145_s9, 4  ;;  %s54_s8 = int_to_ptr.vmem [resolvable:$true] %s53_s8  ;;  %s20_s10 = int_to_ptr.vmem [resolvable:$true] %s19_s10 }
  0x16   :  { %s2023_s13 = scalar_lea.hbm %s2356_s3, 5120 }
  0x17   :  { %p2024_p8 = scmp.ne.s32.totalorder %s2356_s3, %s2023_s13  ;;  %p2027_p9 = scmp.lt.u32.totalorder %s2023_s13, %s2356_s3 }
  0x19   :  { %p2029_p10 = pnand %p2027_p9, %p2024_p8 }
  0x1b   :  { %2032 = shalt.err (!%p2029_p10)
}
  0x1c   :  { %s2033_s1 = scalar_lea.vmem %s54_s8, 5120  ;;  %p2038_p12 = scmp.lt.s32.totalorder %s54_s8, %s54_s8 }
  0x1d   :  { %p2034_p11 = scmp.ne.s32.totalorder %s54_s8, %s2033_s1  ;;  %p2039_p13 = scmp.lt.s32.totalorder %s2033_s1, %s2033_s1 }
  0x1f   :  { %p2040_p0 = por %p2039_p13, %p2038_p12 }
  0x21   :  { %p2041_p1 = pnand %p2040_p0, %p2034_p11 }
  0x23   :  { %2044 = shalt.err (!%p2041_p1)
}
  0x24   :  { %59 = dma.hbm_to_vmem [thread:$0]  %s2356_s3, 5120, %s54_s8, [#allocation9], %s2142_s28, %s2142_s28, %s2143_s29  }
  0x25   :  { %s2045_s22 = scalar_lea.hbm %s2353_s0, 2048 }
  0x26   :  { %p2046_p2 = scmp.ne.s32.totalorder %s2353_s0, %s2045_s22  ;;  %p2049_p3 = scmp.lt.u32.totalorder %s2045_s22, %s2353_s0 }
  0x28   :  { %p2051_p4 = pnand %p2049_p3, %p2046_p2 }
  0x2a   :  { %2054 = shalt.err (!%p2051_p4)
}
  0x2b   :  { %s2055_s27 = scalar_lea.vmem %s20_s10, 2048  ;;  %p2060_p6 = scmp.lt.s32.totalorder %s20_s10, %s20_s10 }
  0x2c   :  { %p2056_p5 = scmp.ne.s32.totalorder %s20_s10, %s2055_s27  ;;  %p2061_p7 = scmp.lt.s32.totalorder %s2055_s27, %s2055_s27 }
  0x2e   :  { %p2062_p8 = por %p2061_p7, %p2060_p6 }
  0x30   :  { %p2063_p9 = pnand %p2062_p8, %p2056_p5 }
  0x32   :  { %2066 = shalt.err (!%p2063_p9)
}
  0x33   :  { %s2146_s3 = smov 128   ;;  %s2147_s28 = smov 8  }
  0x34   :  { %25 = dma.hbm_to_vmem [thread:$0]  %s2353_s0, 2048, %s20_s10, [#allocation3], %s2146_s3, %s2146_s3, %s2147_s28  }
  0x35   :  { %s2148_s6 = smov [#allocation7]   ;;  %s2149_s8 = smov [#allocation10]  }
  0x36   :  { %s44_s7 = sshll.u32 %s2148_s6, 4  ;;  %s65_s9 = sshll.u32 %s2149_s8, 4  ;;  %s45_s7 = int_to_ptr.vmem [resolvable:$true] %s44_s7  ;;  %s66_s9 = int_to_ptr.vmem [resolvable:$true] %s65_s9 }
  0x37   :  { %s2067_s13 = scalar_lea.hbm %s2355_s2, 64 }
  0x38   :  { %p2068_p10 = scmp.ne.s32.totalorder %s2355_s2, %s2067_s13  ;;  %p2071_p11 = scmp.lt.u32.totalorder %s2067_s13, %s2355_s2 }
  0x3a   :  { %p2073_p12 = pnand %p2071_p11, %p2068_p10 }
  0x3c   :  { %2076 = shalt.err (!%p2073_p12)
}
  0x3d   :  { %s2077_s0 = scalar_lea.vmem %s45_s7, 64  ;;  %p2082_p0 = scmp.lt.s32.totalorder %s45_s7, %s45_s7 }
  0x3e   :  { %p2078_p13 = scmp.ne.s32.totalorder %s45_s7, %s2077_s0  ;;  %p2083_p1 = scmp.lt.s32.totalorder %s2077_s0, %s2077_s0 }
  0x40   :  { %p2084_p2 = por %p2083_p1, %p2082_p0 }
  0x42   :  { %p2085_p3 = pnand %p2084_p2, %p2078_p13 }
  0x44   :  { %2088 = shalt.err (!%p2085_p3)
}
  0x45   :  { %47 = dma.hbm_to_vmem [thread:$0]  %s2355_s2, 64, %s45_s7, [#allocation6]  }
  0x46   :  { %s2089_s20 = scalar_lea.hbm %s2357_s4, 256 }
  0x47   :  { %p2090_p4 = scmp.ne.s32.totalorder %s2357_s4, %s2089_s20  ;;  %p2093_p5 = scmp.lt.u32.totalorder %s2089_s20, %s2357_s4 }
  0x49   :  { %p2095_p6 = pnand %p2093_p5, %p2090_p4 }
  0x4b   :  { %2098 = shalt.err (!%p2095_p6)
}
  0x4c   :  { %s2099_s25 = scalar_lea.vmem %s66_s9, 256  ;;  %p2104_p8 = scmp.lt.s32.totalorder %s66_s9, %s66_s9 }
  0x4d   :  { %p2100_p7 = scmp.ne.s32.totalorder %s66_s9, %s2099_s25  ;;  %p2105_p9 = scmp.lt.s32.totalorder %s2099_s25, %s2099_s25 }
  0x4f   :  { %p2106_p10 = por %p2105_p9, %p2104_p8 }
  0x51   :  { %p2107_p11 = pnand %p2106_p10, %p2100_p7 }
  0x53   :  { %2110 = shalt.err (!%p2107_p11)
}
  0x54   :  { %71 = dma.hbm_to_vmem [thread:$0]  %s2357_s4, 256, %s66_s9, [#allocation9], %s2146_s3, %s2146_s3, %s2147_s28  }
  0x55   :  { %2133 = dma.done.wait [#allocation3], 2048  }
  0x56   :  { %2134 = vsyncadd [#allocation3], 4294965248 }
  0x57   :  { %2135 = dma.done.wait [#allocation6], 1088  }
  0x58   :  { %2136 = vsyncadd [#allocation6], 4294966208 }
  0x59   :  { %2137 = dma.done.wait [#allocation9], 5376  }
  0x5a   :  { %2138 = vsyncadd [#allocation9], 4294961920  ;;  %v88_v0 = vld [vmem:[#allocation10] sm:$0xff]  ;;  %vm160_vm0 = vcmask 1043456   ;;  %vm135_vm1 = vcmask 64512   ;;  %v108_v5 = vld [vmem:[#allocation2 + $0x10] sm:$0xff]  ;;  %v131_v35 = vlaneseq }
  0x5b   :  { %v106_v1 = vld [vmem:[#allocation2] sm:$0xff]  ;;  %v107_v2 = vld [vmem:[#allocation2 + $0x8] sm:$0xff]  ;;  %v130_v3 = vpack.c.bf16 %v88_v0, %v88_v0  ;;  %v109_v6 = vld [vmem:[#allocation2 + $0x18] sm:$0xff]  ;;  %vm2151_vm2 = vmmov 0   ;;  %s2152_s4 = smov [#allocation11]  }
  0x5c   :  { %v122_v4 = vpack.c.bf16 %v107_v2, %v106_v1  ;;  %v110_v7 = vld [vmem:[#allocation2 + $0x20] sm:$0xff]  ;;  %v111_v8 = vld [vmem:[#allocation2 + $0x28] sm:$0xff]  ;;  %v123_v10 = vpack.c.bf16 %v109_v6, %v108_v5  ;;  %v112_v12 = vld [vmem:[#allocation2 + $0x30] sm:$0xff]  ;;  %v2257_v36 = vshrl.u32 %v131_v35, 7  ;;  %s1470_s27 = sshll.u32 %s2152_s4, 4  ;;  %s1471_s27 = int_to_ptr.vmem [resolvable:$true] %s1470_s27 }
  0x5d   :  { %1939 = vmatprep.subr.msk.bf16.mxu0 %vm160_vm0, %v130_v3  ;;  %v162_v9 = vsel %vm160_vm0, %v130_v3, 0  ;;  %v124_v11 = vpack.c.bf16 %v111_v8, %v110_v7  ;;  %v113_v13 = vld [vmem:[#allocation2 + $0x38] sm:$0xff]  ;;  %v1952_v14 = vld [vmem:[#allocation8] sm:$0xff]   ;;  %v1953_v15 = vld [vmem:[#allocation8 + $0x8] sm:$0xff]   ;;  %s2111_s3 = scalar_lea.vmem %s1471_s27, 128  ;;  %p2116_p13 = scmp.lt.s32.totalorder %s1471_s27, %s1471_s27 }
  0x5e   :  { %1671 = vmatprep.mubr.msk.bf16.mxu0 %vm135_vm1, %v122_v4  ;;  %1670 = vmatpush3.bf16.msra.mxu0 %v162_v9  ;;  %v114_v16 = vld [vmem:[#allocation2 + $0x40] sm:$0xff]  ;;  %v115_v17 = vld [vmem:[#allocation2 + $0x48] sm:$0xff]  ;;  %v1954_v18 = vld [vmem:[#allocation8 + $0x10] sm:$0xff]   ;;  %v125_v19 = vpack.c.bf16 %v113_v13, %v112_v12  ;;  %v133_v37 = vsub.s32 0, %v2257_v36  ;;  %p2112_p12 = scmp.ne.s32.totalorder %s1471_s27, %s2111_s3  ;;  %p2117_p0 = scmp.lt.s32.totalorder %s2111_s3, %s2111_s3 }
  0x5f   :  { %1687 = vmatprep.subr.bf16.mxu1 %v1952_v14  ;;  %v126_v20 = vpack.c.bf16 %v115_v17, %v114_v16  ;;  %v1955_v21 = vld [vmem:[#allocation8 + $0x18] sm:$0xff]   ;;  %v116_v22 = vld [vmem:[#allocation2 + $0x50] sm:$0xff]  ;;  %v119_v25 = vld [vmem:[#allocation2 + $0x68] sm:$0xff] }
  0x60   :  { %1688 = vmatpush3.bf16.msra.mxu1 %v1952_v14  ;;  %v117_v23 = vld [vmem:[#allocation2 + $0x58] sm:$0xff]  ;;  %v118_v24 = vld [vmem:[#allocation2 + $0x60] sm:$0xff]  ;;  %v1957_v29 = vld [vmem:[#allocation8 + $0x28] sm:$0xff]   ;;  %p2118_p1 = por %p2117_p0, %p2116_p13 }
  0x61   :  { %1672 = vmatmul.mubr.msk.bf16.vlgmr.msra.gmra.mrb[0].mxu0 %vm135_vm1, %v123_v10  ;;  %1689 = vmatprep.subr.bf16.mxu1 %v1953_v15  ;;  %v1956_v26 = vld [vmem:[#allocation8 + $0x20] sm:$0xff]   ;;  %v127_v27 = vpack.c.bf16 %v117_v23, %v116_v22  ;;  %v128_v28 = vpack.c.bf16 %v119_v25, %v118_v24  ;;  %v120_v30 = vld [vmem:[#allocation2 + $0x70] sm:$0xff]  ;;  %v121_v31 = vld [vmem:[#allocation2 + $0x78] sm:$0xff] }
  0x62   :  { %1675 = vmatprep.mubr.msk.bf16.mxu0 %vm135_vm1, %v124_v11  ;;  %v129_v32 = vpack.c.bf16 %v121_v31, %v120_v30  ;;  %v1958_v33 = vld [vmem:[#allocation8 + $0x30] sm:$0xff]   ;;  %v1959_v34 = vld [vmem:[#allocation8 + $0x38] sm:$0xff]   ;;  %v2260_v38 = vld [vmem:[#allocation10 + $0x8] sm:$0xff]  ;;  %p2119_p2 = pnand %p2118_p1, %p2112_p12 }
  0x63   :  { %v134_v39 = vrot.slane %v2260_v38, %v133_v37  ;;  %v2263_v16 = vld [vmem:[#allocation5] sm:$0xff]   ;;  %v1973_v22 = vld [vmem:[#allocation8 + $0x68] sm:$0xff]  }
  0x64   :  { %1690 = vmatpush3.bf16.msra.mxu1 %v1953_v15  ;;  %v1968_v17 = vld [vmem:[#allocation8 + $0x40] sm:$0xff]  }
  0x65   :  { %1691 = vmatprep.subr.bf16.mxu1 %v1954_v18 }
  0x68   :  { %1692 = vmatpush3.bf16.msra.mxu1 %v1954_v18  ;;  %v1969_v18 = vld [vmem:[#allocation8 + $0x48] sm:$0xff]  }
  0x69   :  { %1676 = vmatmul.mubr.msk.bf16.gmra.mrb[4].mxu0 %vm135_vm1, %v125_v19  ;;  %1693 = vmatprep.subr.bf16.mxu1 %v1955_v21  ;;  %v1970_v19 = vld [vmem:[#allocation8 + $0x50] sm:$0xff]  }
  0x6a   :  { %1679 = vmatprep.mubr.msk.bf16.mxu0 %vm135_vm1, %v126_v20  ;;  %v1971_v20 = vld [vmem:[#allocation8 + $0x58] sm:$0xff]  }
  0x6c   :  { %1694 = vmatpush3.bf16.msra.mxu1 %v1955_v21  ;;  %v1972_v21 = vld [vmem:[#allocation8 + $0x60] sm:$0xff]  }
  0x6d   :  { %1695 = vmatprep.subr.bf16.mxu1 %v1956_v26 }
  0x70   :  { %1696 = vmatpush3.bf16.msra.mxu1 %v1956_v26 }
  0x71   :  { %1680 = vmatmul.mubr.msk.bf16.gmra.mrb[8].mxu0 %vm135_vm1, %v127_v27  ;;  %1697 = vmatprep.subr.bf16.mxu1 %v1957_v29 }
  0x72   :  { %1683 = vmatprep.mubr.msk.bf16.mxu0 %vm135_vm1, %v128_v28 }
  0x74   :  { %1698 = vmatpush3.bf16.msra.mxu1 %v1957_v29 }
  0x75   :  { %1699 = vmatprep.subr.bf16.mxu1 %v1958_v33 }
  0x78   :  { %1700 = vmatpush3.bf16.msra.mxu1 %v1958_v33 }
  0x79   :  { %1684 = vmatmul.mubr.msk.bf16.gmra.mrb[12].mxu0 %vm135_vm1, %v129_v32  ;;  %1701 = vmatprep.subr.bf16.mxu1 %v1959_v34 }
  0x7a   :  { %1735 = vmatprep.mubr.bf16.mxu0 %v2263_v16 }
  0x7c   :  { %1702 = vmatpush3.bf16.msra.mxu1 %v1959_v34 }
  0x7d   :  { %1751 = vmatprep.subr.bf16.mxu1 %v1968_v17 }
 0x134   :  { %v1673_v40 = vpop.f32.mrb[0].mxu0 }
 0x135   :  { %v198_v41 = vpop.f32.mrb[1].mxu0  ;;  %v207_v43 = vadd.f32 %v1673_v40, %v134_v39 }
 0x136   :  { %v1674_v42 = vpop.f32.mrb[2].mxu0  ;;  %v199_v46 = vadd.f32 %v198_v41, %v134_v39 }
 0x137   :  { %v210_v44 = vadd.f32 %v1674_v42, %v134_v39  ;;  %v201_v45 = vpop.f32.mrb[3].mxu0 }
 0x138   :  { %v202_v47 = vadd.f32 %v201_v45, %v134_v39 }
 0x139   :  { %v278_v48 = vpack.c.bf16 %v210_v44, %v207_v43 }
 0x13a   :  { %v277_v49 = vpack.c.bf16 %v202_v47, %v199_v46 }
 0x13c   :  { %v1677_v50 = vpop.f32.mrb[4].mxu0  ;;  %1703 = vmatprep.mubr.bf16.mxu1 %v277_v49  ;;  %v2266_v49 = vld [vmem:[#allocation5 + $0x8] sm:$0xff]  }
 0x13d   :  { %v214_v51 = vpop.f32.mrb[5].mxu0  ;;  %1704 = vmatmul.mubr.bf16.vlgmr.msra.gmra.mrb[0].mxu1 %v278_v48  ;;  %v223_v53 = vadd.f32 %v1677_v50, %v134_v39  ;;  %v2268_v50 = vld [vmem:[#allocation5 + $0x10] sm:$0xff]  }
 0x13e   :  { %v1678_v52 = vpop.f32.mrb[6].mxu0  ;;  %v215_v56 = vadd.f32 %v214_v51, %v134_v39  ;;  %1752 = vmatpush3.bf16.msra.mxu1 %v1968_v17  ;;  %v2272_v51 = vld [vmem:[#allocation5 + $0x18] sm:$0xff]  }
 0x13f   :  { %v226_v54 = vadd.f32 %v1678_v52, %v134_v39  ;;  %v217_v55 = vpop.f32.mrb[7].mxu0  ;;  %1753 = vmatprep.subr.bf16.mxu1 %v1969_v18  ;;  %v2274_v52 = vld [vmem:[#allocation5 + $0x20] sm:$0xff]  }
 0x140   :  { %v218_v57 = vadd.f32 %v217_v55, %v134_v39  ;;  %v2284_v55 = vld [vmem:[#allocation5 + $0x38] sm:$0xff]  }
 0x141   :  { %v280_v58 = vpack.c.bf16 %v226_v54, %v223_v53  ;;  %v2278_v53 = vld [vmem:[#allocation5 + $0x28] sm:$0xff]   ;;  %v2280_v54 = vld [vmem:[#allocation5 + $0x30] sm:$0xff]  }
 0x142   :  { %v279_v59 = vpack.c.bf16 %v218_v57, %v215_v56  ;;  %1754 = vmatpush3.bf16.msra.mxu1 %v1969_v18  ;;  %v1974_v56 = vld [vmem:[#allocation8 + $0x70] sm:$0xff]   ;;  %v1975_v57 = vld [vmem:[#allocation8 + $0x78] sm:$0xff]  }
 0x143   :  { %1755 = vmatprep.subr.bf16.mxu1 %v1970_v19 }
 0x144   :  { %v1681_v60 = vpop.f32.mrb[8].mxu0  ;;  %1707 = vmatprep.mubr.bf16.mxu1 %v279_v59 }
 0x145   :  { %v230_v61 = vpop.f32.mrb[9].mxu0  ;;  %1708 = vmatmul.mubr.bf16.gmra.mrb[4].mxu1 %v280_v58  ;;  %v239_v63 = vadd.f32 %v1681_v60, %v134_v39  ;;  %v440_v58 = vsub.s32 1, %v2257_v36 }
 0x146   :  { %v1682_v62 = vpop.f32.mrb[10].mxu0  ;;  %v231_v2 = vadd.f32 %v230_v61, %v134_v39  ;;  %1756 = vmatpush3.bf16.msra.mxu1 %v1970_v19 }
 0x147   :  { %v242_v0 = vadd.f32 %v1682_v62, %v134_v39  ;;  %v233_v1 = vpop.f32.mrb[11].mxu0  ;;  %1757 = vmatprep.subr.bf16.mxu1 %v1971_v20  ;;  %v441_v59 = vrot.slane %v2260_v38, %v440_v58 }
 0x148   :  { %v234_v3 = vadd.f32 %v233_v1, %v134_v39 }
 0x149   :  { %v282_v4 = vpack.c.bf16 %v242_v0, %v239_v63 }
 0x14a   :  { %v281_v5 = vpack.c.bf16 %v234_v3, %v231_v2  ;;  %1758 = vmatpush3.bf16.msra.mxu1 %v1971_v20 }
 0x14b   :  { %1759 = vmatprep.subr.bf16.mxu1 %v1972_v21 }
 0x14c   :  { %v1685_v6 = vpop.f32.mrb[12].mxu0  ;;  %1711 = vmatprep.mubr.bf16.mxu1 %v281_v5 }
 0x14d   :  { %v246_v7 = vpop.f32.mrb[13].mxu0  ;;  %1712 = vmatmul.mubr.bf16.gmra.mrb[8].mxu1 %v282_v4  ;;  %v255_v9 = vadd.f32 %v1685_v6, %v134_v39 }
 0x14e   :  { %v1686_v8 = vpop.f32.mrb[14].mxu0  ;;  %v247_v12 = vadd.f32 %v246_v7, %v134_v39  ;;  %1760 = vmatpush3.bf16.msra.mxu1 %v1972_v21 }
 0x14f   :  { %v258_v10 = vadd.f32 %v1686_v8, %v134_v39  ;;  %v249_v11 = vpop.f32.mrb[15].mxu0  ;;  %1761 = vmatprep.subr.bf16.mxu1 %v1973_v22 }
 0x150   :  { %v250_v13 = vadd.f32 %v249_v11, %v134_v39 }
 0x151   :  { %v284_v14 = vpack.c.bf16 %v258_v10, %v255_v9 }
 0x152   :  { %v283_v15 = vpack.c.bf16 %v250_v13, %v247_v12  ;;  %1762 = vmatpush3.bf16.msra.mxu1 %v1973_v22 }
 0x153   :  { %1763 = vmatprep.subr.bf16.mxu1 %v1974_v56 }
 0x154   :  { %1715 = vmatprep.mubr.bf16.mxu1 %v283_v15 }
 0x155   :  { %1716 = vmatmul.mubr.bf16.gmra.mrb[12].mxu1 %v284_v14 }
 0x156   :  { %1764 = vmatpush3.bf16.msra.mxu1 %v1974_v56 }
 0x157   :  { %1765 = vmatprep.subr.bf16.mxu1 %v1975_v57 }
 0x15a   :  { %1766 = vmatpush3.bf16.msra.mxu1 %v1975_v57 }
 0x210   :  { %v1705_v23 = vpop.f32.mrb[0].mxu1 }
 0x211   :  { %v367_v24 = vpop.f32.mrb[1].mxu1 }
 0x212   :  { %v1706_v25 = vpop.f32.mrb[2].mxu1 }
 0x213   :  { %v431_v26 = vpack.c.bf16 %v1706_v25, %v1705_v23  ;;  %v370_v27 = vpop.f32.mrb[3].mxu1 }
 0x214   :  { %v430_v28 = vpack.c.bf16 %v370_v27, %v367_v24 }
 0x216   :  { %1719 = vmatprep.subr.bf16.mxu0 %v430_v28 }
 0x217   :  { %1720 = vmatpush3.bf16.msra.mxu0 %v430_v28 }
 0x218   :  { %v1709_v29 = vpop.f32.mrb[4].mxu1  ;;  %1721 = vmatprep.subr.bf16.mxu0 %v431_v26 }
 0x219   :  { %v383_v30 = vpop.f32.mrb[5].mxu1 }
 0x21a   :  { %v1710_v31 = vpop.f32.mrb[6].mxu1 }
 0x21b   :  { %v433_v32 = vpack.c.bf16 %v1710_v31, %v1709_v29  ;;  %v386_v33 = vpop.f32.mrb[7].mxu1  ;;  %1722 = vmatpush3.bf16.msra.mxu0 %v431_v26 }
 0x21c   :  { %v432_v34 = vpack.c.bf16 %v386_v33, %v383_v30 }
 0x21e   :  { %1723 = vmatprep.subr.bf16.mxu0 %v432_v34 }
 0x21f   :  { %1724 = vmatpush3.bf16.msra.mxu0 %v432_v34 }
 0x220   :  { %v1713_v35 = vpop.f32.mrb[8].mxu1  ;;  %1725 = vmatprep.subr.bf16.mxu0 %v433_v32 }
 0x221   :  { %v399_v37 = vpop.f32.mrb[9].mxu1 }
 0x222   :  { %v1714_v39 = vpop.f32.mrb[10].mxu1 }
 0x223   :  { %v435_v40 = vpack.c.bf16 %v1714_v39, %v1713_v35  ;;  %v402_v41 = vpop.f32.mrb[11].mxu1  ;;  %1726 = vmatpush3.bf16.msra.mxu0 %v433_v32 }
 0x224   :  { %v434_v42 = vpack.c.bf16 %v402_v41, %v399_v37 }
 0x226   :  { %1727 = vmatprep.subr.bf16.mxu0 %v434_v42 }
 0x227   :  { %1728 = vmatpush3.bf16.msra.mxu0 %v434_v42 }
 0x228   :  { %v1717_v43 = vpop.f32.mrb[12].mxu1  ;;  %1729 = vmatprep.subr.bf16.mxu0 %v435_v40 }
 0x229   :  { %v415_v44 = vpop.f32.mrb[13].mxu1 }
 0x22a   :  { %v1718_v45 = vpop.f32.mrb[14].mxu1 }
 0x22b   :  { %v437_v46 = vpack.c.bf16 %v1718_v45, %v1717_v43  ;;  %v418_v47 = vpop.f32.mrb[15].mxu1  ;;  %1730 = vmatpush3.bf16.msra.mxu0 %v435_v40 }
 0x22c   :  { %v436_v48 = vpack.c.bf16 %v418_v47, %v415_v44 }
 0x22e   :  { %1731 = vmatprep.subr.bf16.mxu0 %v436_v48 }
 0x22f   :  { %1732 = vmatpush3.bf16.msra.mxu0 %v436_v48 }
 0x230   :  { %1733 = vmatprep.subr.bf16.mxu0 %v437_v46 }
 0x233   :  { %1734 = vmatpush3.bf16.msra.mxu0 %v437_v46 }
 0x236   :  { %1736 = vmatmul.mubr.bf16.vlgmr.msra.gmra.mrb[16].mxu0 %v2266_v49 }
 0x237   :  { %1739 = vmatprep.mubr.bf16.mxu0 %v2268_v50 }
 0x23e   :  { %1740 = vmatmul.mubr.bf16.gmra.mrb[20].mxu0 %v2272_v51 }
 0x23f   :  { %1743 = vmatprep.mubr.bf16.mxu0 %v2274_v52 }
 0x246   :  { %1744 = vmatmul.mubr.bf16.gmra.mrb[24].mxu0 %v2278_v53 }
 0x247   :  { %1747 = vmatprep.mubr.bf16.mxu0 %v2280_v54 }
 0x24e   :  { %1748 = vmatmul.mubr.bf16.gmra.mrb[28].mxu0 %v2284_v55 }
 0x24f   :  { %1799 = vmatprep.mubr.bf16.mxu0 %v2263_v16 }
 0x309   :  { %v1737_v60 = vpop.f32.mrb[16].mxu0 }
 0x30a   :  { %v533_v61 = vadd.f32 %v1737_v60, %v441_v59  ;;  %v524_v62 = vpop.f32.mrb[17].mxu0 }
 0x30b   :  { %v525_v63 = vadd.f32 %v524_v62, %v441_v59  ;;  %v1738_v0 = vpop.f32.mrb[18].mxu0 }
 0x30c   :  { %v536_v1 = vadd.f32 %v1738_v0, %v441_v59  ;;  %v527_v2 = vpop.f32.mrb[19].mxu0  ;;  %v589_v4 = vmax.f32 %v533_v61, 0.0  ;;  %v1977_v0 = vld [vmem:[#allocation8 + $0x88] sm:$0xff]  }
 0x30d   :  { %v528_v3 = vadd.f32 %v527_v2, %v441_v59  ;;  %v587_v6 = vmax.f32 %v525_v63, 0.0  ;;  %v1976_v63 = vld [vmem:[#allocation8 + $0x80] sm:$0xff]   ;;  %v1979_v2 = vld [vmem:[#allocation8 + $0x98] sm:$0xff]  }
 0x30e   :  { %v590_v5 = vmax.f32 %v536_v1, 0.0  ;;  %1815 = vmatprep.subr.bf16.mxu1 %v1976_v63  ;;  %v1978_v1 = vld [vmem:[#allocation8 + $0x90] sm:$0xff]  }
 0x30f   :  { %v588_v7 = vmax.f32 %v528_v3, 0.0  ;;  %v1981_v3 = vld [vmem:[#allocation8 + $0xa8] sm:$0xff]  }
 0x310   :  { %v621_v8 = vpack.c.bf16 %v590_v5, %v589_v4 }
 0x311   :  { %v620_v9 = vpack.c.bf16 %v588_v7, %v587_v6  ;;  %v1741_v10 = vpop.f32.mrb[20].mxu0 }
 0x312   :  { %v549_v11 = vadd.f32 %v1741_v10, %v441_v59  ;;  %v540_v12 = vpop.f32.mrb[21].mxu0 }
 0x313   :  { %v541_v13 = vadd.f32 %v540_v12, %v441_v59  ;;  %v1742_v14 = vpop.f32.mrb[22].mxu0  ;;  %1767 = vmatprep.mubr.bf16.mxu1 %v620_v9 }
 0x314   :  { %v552_v15 = vadd.f32 %v1742_v14, %v441_v59  ;;  %v543_v17 = vpop.f32.mrb[23].mxu0  ;;  %1768 = vmatmul.mubr.bf16.vlgmr.msra.gmra.mrb[16].mxu1 %v621_v8  ;;  %v593_v19 = vmax.f32 %v549_v11, 0.0 }
 0x315   :  { %v544_v18 = vadd.f32 %v543_v17, %v441_v59  ;;  %v591_v21 = vmax.f32 %v541_v13, 0.0  ;;  %1816 = vmatpush3.bf16.msra.mxu1 %v1976_v63 }
 0x316   :  { %v594_v20 = vmax.f32 %v552_v15, 0.0  ;;  %1817 = vmatprep.subr.bf16.mxu1 %v1977_v0 }
 0x317   :  { %v592_v22 = vmax.f32 %v544_v18, 0.0 }
 0x318   :  { %v623_v23 = vpack.c.bf16 %v594_v20, %v593_v19 }
 0x319   :  { %v622_v24 = vpack.c.bf16 %v592_v22, %v591_v21  ;;  %v1745_v25 = vpop.f32.mrb[24].mxu0  ;;  %1818 = vmatpush3.bf16.msra.mxu1 %v1977_v0 }
 0x31a   :  { %v565_v26 = vadd.f32 %v1745_v25, %v441_v59  ;;  %v556_v27 = vpop.f32.mrb[25].mxu0  ;;  %1819 = vmatprep.subr.bf16.mxu1 %v1978_v1 }
 0x31b   :  { %v557_v28 = vadd.f32 %v556_v27, %v441_v59  ;;  %v1746_v29 = vpop.f32.mrb[26].mxu0  ;;  %1771 = vmatprep.mubr.bf16.mxu1 %v622_v24 }
 0x31c   :  { %v568_v30 = vadd.f32 %v1746_v29, %v441_v59  ;;  %v559_v31 = vpop.f32.mrb[27].mxu0  ;;  %1772 = vmatmul.mubr.bf16.gmra.mrb[20].mxu1 %v623_v23  ;;  %v597_v33 = vmax.f32 %v565_v26, 0.0  ;;  %v1982_v29 = vld [vmem:[#allocation8 + $0xb0] sm:$0xff]  }
 0x31d   :  { %v560_v32 = vadd.f32 %v559_v31, %v441_v59  ;;  %v595_v35 = vmax.f32 %v557_v28, 0.0  ;;  %1820 = vmatpush3.bf16.msra.mxu1 %v1978_v1  ;;  %v783_v31 = vsub.s32 2, %v2257_v36 }
 0x31e   :  { %v598_v34 = vmax.f32 %v568_v30, 0.0  ;;  %1821 = vmatprep.subr.bf16.mxu1 %v1979_v2  ;;  %v1983_v30 = vld [vmem:[#allocation8 + $0xb8] sm:$0xff]  }
 0x31f   :  { %v596_v37 = vmax.f32 %v560_v32, 0.0  ;;  %v784_v32 = vrot.slane %v2260_v38, %v783_v31 }
 0x320   :  { %v625_v39 = vpack.c.bf16 %v598_v34, %v597_v33 }
 0x321   :  { %v624_v40 = vpack.c.bf16 %v596_v37, %v595_v35  ;;  %v1749_v41 = vpop.f32.mrb[28].mxu0  ;;  %1822 = vmatpush3.bf16.msra.mxu1 %v1979_v2 }
 0x322   :  { %v581_v42 = vadd.f32 %v1749_v41, %v441_v59  ;;  %v572_v43 = vpop.f32.mrb[29].mxu0 }
 0x323   :  { %v573_v44 = vadd.f32 %v572_v43, %v441_v59  ;;  %v1750_v45 = vpop.f32.mrb[30].mxu0  ;;  %1775 = vmatprep.mubr.bf16.mxu1 %v624_v40 }
 0x324   :  { %v584_v46 = vadd.f32 %v1750_v45, %v441_v59  ;;  %v575_v47 = vpop.f32.mrb[31].mxu0  ;;  %1776 = vmatmul.mubr.bf16.gmra.mrb[24].mxu1 %v625_v39  ;;  %v601_v56 = vmax.f32 %v581_v42, 0.0 }
 0x325   :  { %v576_v48 = vadd.f32 %v575_v47, %v441_v59  ;;  %v599_v58 = vmax.f32 %v573_v44, 0.0  ;;  %v1980_v59 = vld [vmem:[#allocation8 + $0xa0] sm:$0xff]  }
 0x326   :  { %v602_v57 = vmax.f32 %v584_v46, 0.0  ;;  %1823 = vmatprep.subr.bf16.mxu1 %v1980_v59 }
 0x327   :  { %v600_v60 = vmax.f32 %v576_v48, 0.0  ;;  %1824 = vmatpush3.bf16.msra.mxu1 %v1980_v59 }
 0x328   :  { %v627_v61 = vpack.c.bf16 %v602_v57, %v601_v56  ;;  %1825 = vmatprep.subr.bf16.mxu1 %v1981_v3 }
 0x329   :  { %v626_v62 = vpack.c.bf16 %v600_v60, %v599_v58 }
 0x32b   :  { %1779 = vmatprep.mubr.bf16.mxu1 %v626_v62  ;;  %1826 = vmatpush3.bf16.msra.mxu1 %v1981_v3 }
 0x32c   :  { %1780 = vmatmul.mubr.bf16.gmra.mrb[28].mxu1 %v627_v61  ;;  %1827 = vmatprep.subr.bf16.mxu1 %v1982_v29 }
 0x32f   :  { %1828 = vmatpush3.bf16.msra.mxu1 %v1982_v29 }
 0x330   :  { %1829 = vmatprep.subr.bf16.mxu1 %v1983_v30 }
 0x333   :  { %1830 = vmatpush3.bf16.msra.mxu1 %v1983_v30 }
 0x3e7   :  { %v1769_v4 = vpop.f32.mrb[16].mxu1 }
 0x3e8   :  { %v710_v5 = vpop.f32.mrb[17].mxu1 }
 0x3e9   :  { %v1770_v6 = vpop.f32.mrb[18].mxu1 }
 0x3ea   :  { %v774_v7 = vpack.c.bf16 %v1770_v6, %v1769_v4  ;;  %v713_v8 = vpop.f32.mrb[19].mxu1 }
 0x3eb   :  { %v773_v9 = vpack.c.bf16 %v713_v8, %v710_v5 }
 0x3ed   :  { %1783 = vmatprep.subr.bf16.mxu0 %v773_v9 }
 0x3ee   :  { %1784 = vmatpush3.bf16.msra.mxu0 %v773_v9 }
 0x3ef   :  { %v1773_v10 = vpop.f32.mrb[20].mxu1  ;;  %1785 = vmatprep.subr.bf16.mxu0 %v774_v7 }
 0x3f0   :  { %v726_v11 = vpop.f32.mrb[21].mxu1 }
 0x3f1   :  { %v1774_v12 = vpop.f32.mrb[22].mxu1 }
 0x3f2   :  { %v776_v13 = vpack.c.bf16 %v1774_v12, %v1773_v10  ;;  %v729_v14 = vpop.f32.mrb[23].mxu1  ;;  %1786 = vmatpush3.bf16.msra.mxu0 %v774_v7 }
 0x3f3   :  { %v775_v15 = vpack.c.bf16 %v729_v14, %v726_v11 }
 0x3f5   :  { %1787 = vmatprep.subr.bf16.mxu0 %v775_v15 }
 0x3f6   :  { %1788 = vmatpush3.bf16.msra.mxu0 %v775_v15 }
 0x3f7   :  { %v1777_v17 = vpop.f32.mrb[24].mxu1  ;;  %1789 = vmatprep.subr.bf16.mxu0 %v776_v13 }
 0x3f8   :  { %v742_v18 = vpop.f32.mrb[25].mxu1 }
 0x3f9   :  { %v1778_v19 = vpop.f32.mrb[26].mxu1 }
 0x3fa   :  { %v778_v20 = vpack.c.bf16 %v1778_v19, %v1777_v17  ;;  %v745_v21 = vpop.f32.mrb[27].mxu1  ;;  %1790 = vmatpush3.bf16.msra.mxu0 %v776_v13 }
 0x3fb   :  { %v777_v22 = vpack.c.bf16 %v745_v21, %v742_v18 }
 0x3fd   :  { %1791 = vmatprep.subr.bf16.mxu0 %v777_v22 }
 0x3fe   :  { %1792 = vmatpush3.bf16.msra.mxu0 %v777_v22 }
 0x3ff   :  { %v1781_v23 = vpop.f32.mrb[28].mxu1  ;;  %1793 = vmatprep.subr.bf16.mxu0 %v778_v20 }
 0x400   :  { %v758_v24 = vpop.f32.mrb[29].mxu1 }
 0x401   :  { %v1782_v25 = vpop.f32.mrb[30].mxu1 }
 0x402   :  { %v780_v26 = vpack.c.bf16 %v1782_v25, %v1781_v23  ;;  %v761_v27 = vpop.f32.mrb[31].mxu1  ;;  %1794 = vmatpush3.bf16.msra.mxu0 %v778_v20 }
 0x403   :  { %v779_v28 = vpack.c.bf16 %v761_v27, %v758_v24 }
 0x405   :  { %1795 = vmatprep.subr.bf16.mxu0 %v779_v28 }
 0x406   :  { %1796 = vmatpush3.bf16.msra.mxu0 %v779_v28 }
 0x407   :  { %1797 = vmatprep.subr.bf16.mxu0 %v780_v26 }
 0x40a   :  { %1798 = vmatpush3.bf16.msra.mxu0 %v780_v26 }
 0x40d   :  { %1800 = vmatmul.mubr.bf16.vlgmr.msra.gmra.mrb[32].mxu0 %v2266_v49 }
 0x40e   :  { %1803 = vmatprep.mubr.bf16.mxu0 %v2268_v50 }
 0x415   :  { %1804 = vmatmul.mubr.bf16.gmra.mrb[36].mxu0 %v2272_v51 }
 0x416   :  { %1807 = vmatprep.mubr.bf16.mxu0 %v2274_v52 }
 0x41d   :  { %1808 = vmatmul.mubr.bf16.gmra.mrb[40].mxu0 %v2278_v53 }
 0x41e   :  { %1811 = vmatprep.mubr.bf16.mxu0 %v2280_v54 }
 0x425   :  { %1812 = vmatmul.mubr.bf16.gmra.mrb[44].mxu0 %v2284_v55 }
 0x426   :  { %1863 = vmatprep.mubr.bf16.mxu0 %v2263_v16 }
 0x4e0   :  { %v1801_v33 = vpop.f32.mrb[32].mxu0 }
 0x4e1   :  { %v828_v34 = vadd.f32 %v1801_v33, %v784_v32  ;;  %v819_v35 = vpop.f32.mrb[33].mxu0 }
 0x4e2   :  { %v820_v37 = vadd.f32 %v819_v35, %v784_v32  ;;  %v1802_v39 = vpop.f32.mrb[34].mxu0 }
 0x4e3   :  { %v831_v40 = vadd.f32 %v1802_v39, %v784_v32  ;;  %v822_v41 = vpop.f32.mrb[35].mxu0  ;;  %v884_v43 = vmax.f32 %v828_v34, 0.0 }
 0x4e4   :  { %v823_v42 = vadd.f32 %v822_v41, %v784_v32  ;;  %v882_v44 = vmax.f32 %v820_v37, 0.0 }
 0x4e5   :  { %v885_v16 = vmax.f32 %v831_v40, 0.0 }
 0x4e6   :  { %v883_v45 = vmax.f32 %v823_v42, 0.0 }
 0x4e7   :  { %v916_v46 = vpack.c.bf16 %v885_v16, %v884_v43 }
 0x4e8   :  { %v915_v47 = vpack.c.bf16 %v883_v45, %v882_v44  ;;  %v1805_v48 = vpop.f32.mrb[36].mxu0 }
 0x4e9   :  { %v844_v56 = vadd.f32 %v1805_v48, %v784_v32  ;;  %v835_v57 = vpop.f32.mrb[37].mxu0 }
 0x4ea   :  { %v836_v58 = vadd.f32 %v835_v57, %v784_v32  ;;  %v1806_v60 = vpop.f32.mrb[38].mxu0  ;;  %1831 = vmatprep.mubr.bf16.mxu1 %v915_v47 }
 0x4eb   :  { %v847_v61 = vadd.f32 %v1806_v60, %v784_v32  ;;  %v838_v62 = vpop.f32.mrb[39].mxu0  ;;  %1832 = vmatmul.mubr.bf16.vlgmr.msra.gmra.mrb[32].mxu1 %v916_v46  ;;  %v888_v0 = vmax.f32 %v844_v56, 0.0 }
 0x4ec   :  { %v839_v63 = vadd.f32 %v838_v62, %v784_v32  ;;  %v886_v2 = vmax.f32 %v836_v58, 0.0 }
 0x4ed   :  { %v889_v1 = vmax.f32 %v847_v61, 0.0 }
 0x4ee   :  { %v887_v59 = vmax.f32 %v839_v63, 0.0 }
 0x4ef   :  { %v918_v3 = vpack.c.bf16 %v889_v1, %v888_v0 }
 0x4f0   :  { %v917_v4 = vpack.c.bf16 %v887_v59, %v886_v2  ;;  %v1809_v5 = vpop.f32.mrb[40].mxu0  ;;  %v2150_v59 = vmov 0.0  }
 0x4f1   :  { %v860_v6 = vadd.f32 %v1809_v5, %v784_v32  ;;  %v851_v7 = vpop.f32.mrb[41].mxu0  ;;  %1879 = vmatprep.subr.bf16.mxu1 %v2150_v59 }
 0x4f2   :  { %v852_v8 = vadd.f32 %v851_v7, %v784_v32  ;;  %v1810_v9 = vpop.f32.mrb[42].mxu0  ;;  %1835 = vmatprep.mubr.bf16.mxu1 %v917_v4 }
 0x4f3   :  { %v863_v10 = vadd.f32 %v1810_v9, %v784_v32  ;;  %v854_v11 = vpop.f32.mrb[43].mxu0  ;;  %1836 = vmatmul.mubr.bf16.gmra.mrb[36].mxu1 %v918_v3  ;;  %v892_v13 = vmax.f32 %v860_v6, 0.0  ;;  %v1078_v3 = vsub.s32 3, %v2257_v36 }
 0x4f4   :  { %v855_v12 = vadd.f32 %v854_v11, %v784_v32  ;;  %v890_v15 = vmax.f32 %v852_v8, 0.0 }
 0x4f5   :  { %v893_v14 = vmax.f32 %v863_v10, 0.0  ;;  %v1079_v4 = vrot.slane %v2260_v38, %v1078_v3  ;;  %v1994_v3 = vld [vmem:[#allocation8 + $0x110] sm:$0xff]  }
 0x4f6   :  { %v891_v17 = vmax.f32 %v855_v12, 0.0 }
 0x4f7   :  { %v920_v18 = vpack.c.bf16 %v893_v14, %v892_v13 }
 0x4f8   :  { %v919_v19 = vpack.c.bf16 %v891_v17, %v890_v15  ;;  %v1813_v20 = vpop.f32.mrb[44].mxu0 }
 0x4f9   :  { %v876_v21 = vadd.f32 %v1813_v20, %v784_v32  ;;  %v867_v22 = vpop.f32.mrb[45].mxu0 }
 0x4fa   :  { %v868_v23 = vadd.f32 %v867_v22, %v784_v32  ;;  %v1814_v24 = vpop.f32.mrb[46].mxu0  ;;  %1839 = vmatprep.mubr.bf16.mxu1 %v919_v19 }
 0x4fb   :  { %v879_v25 = vadd.f32 %v1814_v24, %v784_v32  ;;  %v870_v26 = vpop.f32.mrb[47].mxu0  ;;  %1840 = vmatmul.mubr.bf16.gmra.mrb[40].mxu1 %v920_v18  ;;  %v896_v28 = vmax.f32 %v876_v21, 0.0 }
 0x4fc   :  { %v871_v27 = vadd.f32 %v870_v26, %v784_v32  ;;  %v894_v30 = vmax.f32 %v868_v23, 0.0 }
 0x4fd   :  { %v897_v29 = vmax.f32 %v879_v25, 0.0 }
 0x4fe   :  { %v895_v31 = vmax.f32 %v871_v27, 0.0 }
 0x4ff   :  { %v922_v33 = vpack.c.bf16 %v897_v29, %v896_v28 }
 0x500   :  { %v921_v34 = vpack.c.bf16 %v895_v31, %v894_v30 }
 0x502   :  { %1843 = vmatprep.mubr.bf16.mxu1 %v921_v34 }
 0x503   :  { %1844 = vmatmul.mubr.bf16.gmra.mrb[44].mxu1 %v922_v33 }
 0x504   :  { %1895 = vmatprep.mubr.msk.bf16.mxu1 %vm2151_vm2, %v2150_v59 }
 0x5be   :  { %v1833_v35 = vpop.f32.mrb[32].mxu1 }
 0x5bf   :  { %v1005_v37 = vpop.f32.mrb[33].mxu1 }
 0x5c0   :  { %v1834_v39 = vpop.f32.mrb[34].mxu1 }
 0x5c1   :  { %v1069_v40 = vpack.c.bf16 %v1834_v39, %v1833_v35  ;;  %v1008_v41 = vpop.f32.mrb[35].mxu1 }
 0x5c2   :  { %v1068_v42 = vpack.c.bf16 %v1008_v41, %v1005_v37 }
 0x5c4   :  { %1847 = vmatprep.subr.bf16.mxu0 %v1068_v42 }
 0x5c5   :  { %1848 = vmatpush3.bf16.msra.mxu0 %v1068_v42 }
 0x5c6   :  { %v1837_v43 = vpop.f32.mrb[36].mxu1  ;;  %1849 = vmatprep.subr.bf16.mxu0 %v1069_v40 }
 0x5c7   :  { %v1021_v16 = vpop.f32.mrb[37].mxu1 }
 0x5c8   :  { %v1838_v32 = vpop.f32.mrb[38].mxu1 }
 0x5c9   :  { %v1071_v44 = vpack.c.bf16 %v1838_v32, %v1837_v43  ;;  %v1024_v45 = vpop.f32.mrb[39].mxu1  ;;  %1850 = vmatpush3.bf16.msra.mxu0 %v1069_v40 }
 0x5ca   :  { %v1070_v46 = vpack.c.bf16 %v1024_v45, %v1021_v16 }
 0x5cc   :  { %1851 = vmatprep.subr.bf16.mxu0 %v1070_v46 }
 0x5cd   :  { %1852 = vmatpush3.bf16.msra.mxu0 %v1070_v46 }
 0x5ce   :  { %v1841_v47 = vpop.f32.mrb[40].mxu1  ;;  %1853 = vmatprep.subr.bf16.mxu0 %v1071_v44 }
 0x5cf   :  { %v1037_v48 = vpop.f32.mrb[41].mxu1 }
 0x5d0   :  { %v1842_v56 = vpop.f32.mrb[42].mxu1 }
 0x5d1   :  { %v1073_v57 = vpack.c.bf16 %v1842_v56, %v1841_v47  ;;  %v1040_v58 = vpop.f32.mrb[43].mxu1  ;;  %1854 = vmatpush3.bf16.msra.mxu0 %v1071_v44 }
 0x5d2   :  { %v1072_v60 = vpack.c.bf16 %v1040_v58, %v1037_v48 }
 0x5d4   :  { %1855 = vmatprep.subr.bf16.mxu0 %v1072_v60 }
 0x5d5   :  { %1856 = vmatpush3.bf16.msra.mxu0 %v1072_v60 }
 0x5d6   :  { %v1845_v61 = vpop.f32.mrb[44].mxu1  ;;  %1857 = vmatprep.subr.bf16.mxu0 %v1073_v57 }
 0x5d7   :  { %v1053_v62 = vpop.f32.mrb[45].mxu1 }
 0x5d8   :  { %v1846_v63 = vpop.f32.mrb[46].mxu1 }
 0x5d9   :  { %v1075_v0 = vpack.c.bf16 %v1846_v63, %v1845_v61  ;;  %v1056_v1 = vpop.f32.mrb[47].mxu1  ;;  %1858 = vmatpush3.bf16.msra.mxu0 %v1073_v57 }
 0x5da   :  { %v1074_v2 = vpack.c.bf16 %v1056_v1, %v1053_v62 }
 0x5dc   :  { %1859 = vmatprep.subr.bf16.mxu0 %v1074_v2 }
 0x5dd   :  { %1860 = vmatpush3.bf16.msra.mxu0 %v1074_v2 }
 0x5de   :  { %1861 = vmatprep.subr.bf16.mxu0 %v1075_v0 }
 0x5e1   :  { %1862 = vmatpush3.bf16.msra.mxu0 %v1075_v0 }
 0x5e2   :  { %1899 = vmatprep.subr.bf16.mxu0 %v2150_v59 }
 0x5e4   :  { %1864 = vmatmul.mubr.bf16.vlgmr.msra.gmra.mrb[48].mxu0 %v2266_v49  ;;  %v1984_v49 = vld [vmem:[#allocation8 + $0xc0] sm:$0xff]  }
 0x5e5   :  { %1867 = vmatprep.mubr.bf16.mxu0 %v2268_v50  ;;  %1900 = vmatpush3.bf16.msra.mxu0 %v1984_v49  ;;  %v1985_v50 = vld [vmem:[#allocation8 + $0xc8] sm:$0xff]  }
 0x5e6   :  { %1901 = vmatprep.subr.bf16.mxu0 %v2150_v59 }
 0x5e9   :  { %1902 = vmatpush3.bf16.msra.mxu0 %v1985_v50 }
 0x5ea   :  { %1903 = vmatprep.subr.bf16.mxu0 %v2150_v59 }
 0x5ec   :  { %1868 = vmatmul.mubr.bf16.gmra.mrb[52].mxu0 %v2272_v51  ;;  %v1986_v51 = vld [vmem:[#allocation8 + $0xd0] sm:$0xff]  }
 0x5ed   :  { %1871 = vmatprep.mubr.bf16.mxu0 %v2274_v52  ;;  %1904 = vmatpush3.bf16.msra.mxu0 %v1986_v51  ;;  %v1987_v52 = vld [vmem:[#allocation8 + $0xd8] sm:$0xff]  }
 0x5ee   :  { %1905 = vmatprep.subr.bf16.mxu0 %v2150_v59 }
 0x5f1   :  { %1906 = vmatpush3.bf16.msra.mxu0 %v1987_v52  ;;  %v1193_v52 = vld [vmem:[#allocation7] sm:$0xf] }
 0x5f2   :  { %1907 = vmatprep.subr.bf16.mxu0 %v2150_v59 }
 0x5f4   :  { %1872 = vmatmul.mubr.bf16.gmra.mrb[56].mxu0 %v2278_v53  ;;  %v1988_v53 = vld [vmem:[#allocation8 + $0xe0] sm:$0xff]  }
 0x5f5   :  { %1875 = vmatprep.mubr.bf16.mxu0 %v2280_v54  ;;  %1908 = vmatpush3.bf16.msra.mxu0 %v1988_v53  ;;  %v1989_v54 = vld [vmem:[#allocation8 + $0xe8] sm:$0xff]   ;;  %v1991_v53 = vld [vmem:[#allocation8 + $0xf8] sm:$0xff]  }
 0x5f6   :  { %1909 = vmatprep.subr.bf16.mxu0 %v2150_v59 }
 0x5f9   :  { %1910 = vmatpush3.bf16.msra.mxu0 %v1989_v54  ;;  %v1992_v54 = vld [vmem:[#allocation8 + $0x100] sm:$0xff]  }
 0x5fa   :  { %1911 = vmatprep.subr.bf16.mxu0 %v2150_v59 }
 0x5fc   :  { %1876 = vmatmul.mubr.bf16.gmra.mrb[60].mxu0 %v2284_v55  ;;  %v1990_v55 = vld [vmem:[#allocation8 + $0xf0] sm:$0xff]  }
 0x5fd   :  { %1915 = vmatprep.mubr.msk.bf16.mxu0 %vm2151_vm2, %v2150_v59  ;;  %1912 = vmatpush3.bf16.msra.mxu0 %v1990_v55  ;;  %v1993_v55 = vld [vmem:[#allocation8 + $0x108] sm:$0xff]  }
 0x5fe   :  { %1913 = vmatprep.subr.bf16.mxu0 %v2150_v59 }
 0x601   :  { %1914 = vmatpush3.bf16.msra.mxu0 %v1991_v53 }
 0x6b7   :  { %v1865_v5 = vpop.f32.mrb[48].mxu0 }
 0x6b8   :  { %v1123_v6 = vadd.f32 %v1865_v5, %v1079_v4  ;;  %v1114_v7 = vpop.f32.mrb[49].mxu0  ;;  %v1996_v5 = vld [vmem:[#allocation8 + $0x120] sm:$0xff]  }
 0x6b9   :  { %v1115_v8 = vadd.f32 %v1114_v7, %v1079_v4  ;;  %v1866_v9 = vpop.f32.mrb[50].mxu0 }
 0x6ba   :  { %v1126_v10 = vadd.f32 %v1866_v9, %v1079_v4  ;;  %v1117_v11 = vpop.f32.mrb[51].mxu0  ;;  %v1179_v13 = vmax.f32 %v1123_v6, 0.0  ;;  %v1997_v6 = vld [vmem:[#allocation8 + $0x128] sm:$0xff]  }
 0x6bb   :  { %v1118_v12 = vadd.f32 %v1117_v11, %v1079_v4  ;;  %v1177_v15 = vmax.f32 %v1115_v8, 0.0 }
 0x6bc   :  { %v1180_v14 = vmax.f32 %v1126_v10, 0.0 }
 0x6bd   :  { %v1178_v17 = vmax.f32 %v1118_v12, 0.0  ;;  %v1998_v12 = vld [vmem:[#allocation8 + $0x130] sm:$0xff]  }
 0x6be   :  { %v1195_v18 = vpack.c.bf16 %v1180_v14, %v1179_v13  ;;  %v1999_v13 = vld [vmem:[#allocation8 + $0x138] sm:$0xff]   ;;  %v1262_v14 = vsub.s32 4, %v2257_v36 }
 0x6bf   :  { %v1194_v19 = vpack.c.bf16 %v1178_v17, %v1177_v15  ;;  %v1869_v20 = vpop.f32.mrb[52].mxu0  ;;  %v2000_v15 = vld [vmem:[#allocation10 + $0x8] sm:$0xff] }
 0x6c0   :  { %v1139_v21 = vadd.f32 %v1869_v20, %v1079_v4  ;;  %v1130_v22 = vpop.f32.mrb[53].mxu0  ;;  %v1263_v17 = vrot.slane %v2000_v15, %v1262_v14 }
 0x6c1   :  { %v1131_v23 = vadd.f32 %v1130_v22, %v1079_v4  ;;  %v1870_v24 = vpop.f32.mrb[54].mxu0  ;;  %1880 = vmatpush3.bf16.msra.mxu1 %v1194_v19 }
 0x6c2   :  { %v1142_v38 = vadd.f32 %v1870_v24, %v1079_v4  ;;  %v1133_v25 = vpop.f32.mrb[55].mxu0  ;;  %1881 = vmatprep.subr.bf16.mxu1 %v2150_v59  ;;  %v1183_v27 = vmax.f32 %v1139_v21, 0.0 }
 0x6c3   :  { %v1134_v26 = vadd.f32 %v1133_v25, %v1079_v4  ;;  %v1181_v29 = vmax.f32 %v1131_v23, 0.0 }
 0x6c4   :  { %v1184_v28 = vmax.f32 %v1142_v38, 0.0  ;;  %v1373_v38 = vsub.s32 5, %v2257_v36 }
 0x6c5   :  { %v1182_v30 = vmax.f32 %v1134_v26, 0.0  ;;  %1882 = vmatpush3.bf16.msra.mxu1 %v1195_v18 }
 0x6c6   :  { %v1197_v31 = vpack.c.bf16 %v1184_v28, %v1183_v27  ;;  %1883 = vmatprep.subr.bf16.mxu1 %v2150_v59  ;;  %v1374_v25 = vrot.slane %v2000_v15, %v1373_v38 }
 0x6c7   :  { %v1196_v33 = vpack.c.bf16 %v1182_v30, %v1181_v29  ;;  %v1873_v34 = vpop.f32.mrb[56].mxu0 }
 0x6c8   :  { %v1155_v35 = vadd.f32 %v1873_v34, %v1079_v4  ;;  %v1146_v37 = vpop.f32.mrb[57].mxu0 }
 0x6c9   :  { %v1147_v39 = vadd.f32 %v1146_v37, %v1079_v4  ;;  %v1874_v40 = vpop.f32.mrb[58].mxu0  ;;  %1884 = vmatpush3.bf16.msra.mxu1 %v1196_v33 }
 0x6ca   :  { %v1158_v41 = vadd.f32 %v1874_v40, %v1079_v4  ;;  %v1149_v42 = vpop.f32.mrb[59].mxu0  ;;  %1885 = vmatprep.subr.bf16.mxu1 %v2150_v59  ;;  %v1187_v16 = vmax.f32 %v1155_v35, 0.0 }
 0x6cb   :  { %v1150_v43 = vadd.f32 %v1149_v42, %v1079_v4  ;;  %v1185_v44 = vmax.f32 %v1147_v39, 0.0 }
 0x6cc   :  { %v1188_v32 = vmax.f32 %v1158_v41, 0.0 }
 0x6cd   :  { %v1186_v45 = vmax.f32 %v1150_v43, 0.0  ;;  %1886 = vmatpush3.bf16.msra.mxu1 %v1197_v31 }
 0x6ce   :  { %v1199_v46 = vpack.c.bf16 %v1188_v32, %v1187_v16  ;;  %1887 = vmatprep.subr.bf16.mxu1 %v2150_v59 }
 0x6cf   :  { %v1198_v47 = vpack.c.bf16 %v1186_v45, %v1185_v44  ;;  %v1877_v48 = vpop.f32.mrb[60].mxu0 }
 0x6d0   :  { %v1171_v56 = vadd.f32 %v1877_v48, %v1079_v4  ;;  %v1162_v57 = vpop.f32.mrb[61].mxu0 }
 0x6d1   :  { %v1163_v58 = vadd.f32 %v1162_v57, %v1079_v4  ;;  %v1878_v60 = vpop.f32.mrb[62].mxu0  ;;  %1888 = vmatpush3.bf16.msra.mxu1 %v1198_v47 }
 0x6d2   :  { %v1174_v61 = vadd.f32 %v1878_v60, %v1079_v4  ;;  %v1165_v62 = vpop.f32.mrb[63].mxu0  ;;  %1889 = vmatprep.subr.bf16.mxu1 %v2150_v59  ;;  %v1191_v0 = vmax.f32 %v1171_v56, 0.0 }
 0x6d3   :  { %v1166_v63 = vadd.f32 %v1165_v62, %v1079_v4  ;;  %v1189_v2 = vmax.f32 %v1163_v58, 0.0  ;;  %v1995_v4 = vld [vmem:[#allocation8 + $0x118] sm:$0xff]  }
 0x6d4   :  { %v1192_v1 = vmax.f32 %v1174_v61, 0.0 }
 0x6d5   :  { %v1190_v49 = vmax.f32 %v1166_v63, 0.0  ;;  %1890 = vmatpush3.bf16.msra.mxu1 %v1199_v46 }
 0x6d6   :  { %v1201_v50 = vpack.c.bf16 %v1192_v1, %v1191_v0  ;;  %1891 = vmatprep.subr.bf16.mxu1 %v2150_v59 }
 0x6d7   :  { %v1200_v51 = vpack.c.bf16 %v1190_v49, %v1189_v2 }
 0x6d9   :  { %1892 = vmatpush3.bf16.msra.mxu1 %v1200_v51 }
 0x6da   :  { %1893 = vmatprep.subr.bf16.mxu1 %v2150_v59 }
 0x6dd   :  { %1894 = vmatpush3.bf16.msra.mxu1 %v1201_v50 }
 0x6de   :  { %1919 = vmatprep.subr.bf16.mxu1 %v2150_v59 }
 0x6e0   :  { %1896 = vmatmul.mubr.bf16.vlgmr.msra.gmra.mrb[48].mxu1 %v1193_v52 }
 0x6e1   :  { %1935 = vmatprep.mubr.msk.bf16.mxu1 %vm2151_vm2, %v2150_v59  ;;  %1920 = vmatpush3.bf16.msra.mxu1 %v1992_v54 }
 0x6e2   :  { %1921 = vmatprep.subr.bf16.mxu1 %v2150_v59 }
 0x6e5   :  { %1922 = vmatpush3.bf16.msra.mxu1 %v1993_v55 }
 0x6e6   :  { %1923 = vmatprep.subr.bf16.mxu1 %v2150_v59 }
 0x6e9   :  { %1924 = vmatpush3.bf16.msra.mxu1 %v1994_v3 }
 0x6ea   :  { %1925 = vmatprep.subr.bf16.mxu1 %v2150_v59 }
 0x6ed   :  { %1926 = vmatpush3.bf16.msra.mxu1 %v1995_v4 }
 0x6ee   :  { %1927 = vmatprep.subr.bf16.mxu1 %v2150_v59 }
 0x6f1   :  { %1928 = vmatpush3.bf16.msra.mxu1 %v1996_v5 }
 0x6f2   :  { %1929 = vmatprep.subr.bf16.mxu1 %v2150_v59 }
 0x6f5   :  { %1930 = vmatpush3.bf16.msra.mxu1 %v1997_v6 }
 0x6f6   :  { %1931 = vmatprep.subr.bf16.mxu1 %v2150_v59 }
 0x6f9   :  { %1932 = vmatpush3.bf16.msra.mxu1 %v1998_v12 }
 0x6fa   :  { %1933 = vmatprep.subr.bf16.mxu1 %v2150_v59 }
 0x6fd   :  { %1934 = vmatpush3.bf16.msra.mxu1 %v1999_v13 }
 0x7b3   :  { %v1236_v7 = vpop.f32.mrb[48].mxu1 }
 0x7b4   :  { %v1259_v8 = vpack.c.bf16 %v1236_v7, %v1236_v7  ;;  %v1897_v9 = vpop.f32.mrb[49].mxu1 }
 0x7b5   :  { %v1239_v10 = vpop.f32.mrb[50].mxu1 }
 0x7b6   :  { %v1898_v11 = vpop.f32.mrb[51].mxu1  ;;  %1916 = vmatmul.mubr.bf16.vlgmr.msra.gmra.mrb[64].mxu0 %v1259_v8 }
 0x889   :  { %v1346_v18 = vpop.f32.mrb[64].mxu0 }
 0x88a   :  { %v1347_v19 = vadd.f32 %v1346_v18, %v1263_v17  ;;  %v1917_v20 = vpop.f32.mrb[65].mxu0 }
 0x88b   :  { %v1349_v21 = vpop.f32.mrb[66].mxu0 }
 0x88c   :  { %v1352_v22 = vmax.f32 %v1347_v19, 0.0  ;;  %v1918_v23 = vpop.f32.mrb[67].mxu0 }
 0x88e   :  { %v1370_v24 = vpack.c.bf16 %v1352_v22, %v1352_v22 }
 0x890   :  { %1936 = vmatmul.mubr.bf16.vlgmr.msra.gmra.mrb[52].mxu1 %v1370_v24 }
 0x963   :  { %v1457_v59 = vpop.f32.mrb[52].mxu1 }
 0x964   :  { %v1458_v26 = vadd.f32 %v1457_v59, %v1374_v25  ;;  %v1937_v27 = vpop.f32.mrb[53].mxu1 }
 0x965   :  { %v1460_v28 = vpop.f32.mrb[54].mxu1 }
 0x966   :  { %1463 = vst [vmem:[#allocation11] sm:$0xff] %v1458_v26  ;;  %v1938_v29 = vpop.f32.mrb[55].mxu1 }
 0x967   :  { %2122 = shalt.err (!%p2119_p2)
}
 0x968   :  { %s2123_s30 = scalar_lea.hbm %s2358_s5, 128 }
 0x969   :  { %p2124_p3 = scmp.ne.s32.totalorder %s2358_s5, %s2123_s30  ;;  %p2127_p4 = scmp.lt.u32.totalorder %s2123_s30, %s2358_s5 }
 0x96b   :  { %p2129_p5 = pnand %p2127_p4, %p2124_p3 }
 0x96d   :  { %2132 = shalt.err (!%p2129_p5)
}
 0x96e   :  { %1473 = dma.vmem_to_hbm [thread:$0]  %s1471_s27, 128, %s2358_s5, [#allocation4]  }
 0x96f   :  { %2139 = dma.done.wait [#allocation4], 128  }
 0x970   :  { %2140 = vsyncadd [#allocation4], 4294967168 }
 0x971   :  { %1477 = vsyncpa [#allocation3], 1 }
 0x972   :  { %1478 = vsyncpa [#allocation6], 1 }
 0x973   :  { %1479 = vsyncpa [#allocation9], 1 }
 0x974   :  { %1480 = vsyncpa [#allocation4], 1 }

</bundles_post_ra>
